<compile_context>
chip_gen: v7x
topology: tpu7x:2x2x1
jax: 0.10.0
libtpu: 0.0.40
codegen_flags: <defaults>
</compile_context>

<pallas_src>
import jax
import jax.numpy as jnp
from jax.experimental import pallas as pl
from jax.experimental.pallas import tpu as pltpu

INPUT_DIM = 2
HIDDEN_DIM = 32
LAYER_DIM = 2
OUTPUT_DIM = 1  # declared in __init__ but unused by forward()

# Batch tile: large enough to amortize per-grid-step overhead (~0.35 us), multiple of 32 so
# the int8 output tiles cleanly; 4096 rows of (x + out) is well under VMEM on all generations.
MAX_TILE_ROWS = 4096


def _round_up(n, m):
    return ((n + m - 1) // m) * m


def _make_rnn_kernel(num_layers):
    """Build a kernel closure for a fixed (static) number of stacked RNN layers."""

    def kernel(x_ref, *refs):
        # refs = [w_0, b_0, w_1, b_1, ..., out_ref]
        out_ref = refs[-1]
        param_refs = refs[:-1]

        # Fused x.type(torch.LongTensor) emulation: truncate toward zero, compute in f32.
        h = x_ref[...].astype(jnp.int32).astype(jnp.float32)  # (TB, 2)

        for layer in range(num_layers):
            w_ref = param_refs[2 * layer]       # (in, H)  -- already transposed
            b_ref = param_refs[2 * layer + 1]   # (1, H)   -- b_ih + b_hh combined
            # seq_len == 1 and h0 == 0  =>  recurrent term (h_{t-1} @ W_hh^T) is zero.
            if layer == 0:
                # K=2 matmul is <1% MXU utilization; two VPU broadcast FMAs are cheaper.
                z = (h[:, 0:1] * w_ref[0:1, :]
                     + h[:, 1:2] * w_ref[1:2, :]
                     + b_ref[...])
            else:
                z = jnp.dot(h, w_ref[...],
                            preferred_element_type=jnp.float32) + b_ref[...]
            if layer < num_layers - 1:
                h = jnp.tanh(z)
            else:
                # tanh is strictly monotone with tanh(0)=0, so (tanh(z)>0) == (z>0):
                # skip the final EUP pass and threshold the pre-activation.
                h = z

        # out[:, -1, :] with seq_len == 1 is simply h; threshold to {0, 1} as int8.
        out_ref[...] = (h > 0).astype(jnp.int8)

    return kernel


def init_params(key):
    """Deterministic nn.RNN-style init: U(-1/sqrt(H), 1/sqrt(H)) for every tensor."""
    params = []
    bound = 1.0 / (HIDDEN_DIM ** 0.5)
    in_dim = INPUT_DIM
    for _ in range(LAYER_DIM):
        key, k1, k2, k3, k4 = jax.random.split(key, 5)
        w_ih = jax.random.uniform(k1, (HIDDEN_DIM, in_dim), jnp.float32, -bound, bound)
        w_hh = jax.random.uniform(k2, (HIDDEN_DIM, HIDDEN_DIM), jnp.float32, -bound, bound)  # noqa: F841
        b_ih = jax.random.uniform(k3, (HIDDEN_DIM,), jnp.float32, -bound, bound)
        b_hh = jax.random.uniform(k4, (HIDDEN_DIM,), jnp.float32, -bound, bound)
        # Pre-transpose W_ih, fold the two biases; W_hh only multiplies the all-zero initial
        # hidden state here, so it drops out of the math.
        params.append((w_ih.T, (b_ih + b_hh).reshape(1, HIDDEN_DIM)))
        in_dim = HIDDEN_DIM
    return params


def rnn_model_forward(x, params):
    # x.view(-1, 1, 2): seq axis (length 1) is squeezed; rows become the batch.
    x2d = x.reshape(-1, INPUT_DIM).astype(jnp.float32)
    batch = x2d.shape[0]

    # Batch tile size (multiple of 32); pad the batch to a multiple of the tile.
    tb = min(MAX_TILE_ROWS, _round_up(batch, 32))
    padded = _round_up(batch, tb)
    if padded != batch:
        x2d = jnp.pad(x2d, ((0, padded - batch), (0, 0)))

    flat_params = []
    for w, b in params:
        flat_params.extend([w, b])

    kernel = _make_rnn_kernel(len(params))

    # x and out are tiled over the batch grid; weights/biases stay resident (constant maps).
    in_specs = [pl.BlockSpec((tb, INPUT_DIM), lambda i: (i, 0))]
    for arr in flat_params:
        in_specs.append(pl.BlockSpec(arr.shape, lambda i: (0, 0)))

    out = pl.pallas_call(
        kernel,
        out_shape=jax.ShapeDtypeStruct((padded, HIDDEN_DIM), jnp.int8),
        grid=(padded // tb,),
        in_specs=in_specs,
        out_specs=pl.BlockSpec((tb, HIDDEN_DIM), lambda i: (i, 0)),
        compiler_params=pltpu.CompilerParams(
            dimension_semantics=("parallel",),
        ),
    )(x2d, *flat_params)

    # Drop the padded rows.
    return out[:batch]


if __name__ == "__main__":
    key = jax.random.PRNGKey(0)
    key, pkey, xkey = jax.random.split(key, 3)

    params = init_params(pkey)

    # Small input; total elements must be divisible by 2 for the view(-1, 1, 2).
    # (8, 4) -> reshaped inside the wrapper to a (16, 2) batch of seq-len-1 rows.
    x = jax.random.uniform(xkey, (8, 4), jnp.float32, -4.0, 4.0)

    out = rnn_model_forward(x, params)
    out = jax.block_until_ready(out)

    assert out.shape == (16, HIDDEN_DIM)
    assert out.dtype == jnp.int8
    assert bool(jnp.all((out == 0) | (out == 1)))

    print("KERNEL_OK")
</pallas_src>

<mosaic_0001>
module attributes {stable_mosaic.version = 11 : i64} {
  func.func @kernel(%arg0: i32, %arg1: memref<32x2xf32, #tpu.memory_space<vmem>>, %arg2: memref<2x32xf32, #tpu.memory_space<vmem>>, %arg3: memref<1x32xf32, #tpu.memory_space<vmem>>, %arg4: memref<32x32xf32, #tpu.memory_space<vmem>>, %arg5: memref<1x32xf32, #tpu.memory_space<vmem>>, %arg6: memref<32x32xi8, #tpu.memory_space<vmem>>) attributes {dimension_semantics = [#tpu.dimension_semantics<parallel>], iteration_bounds = array<i64: 1>, scalar_prefetch = 0 : i64, scratch_operands = 0 : i64, tpu.core_type = #tpu.core_type<tc>, window_params = [{transform_indices = @transform_0, window_bounds = array<i64: 32, 2>}, {pipeline_mode = #tpu.pipeline_mode<synchronous>, transform_indices = @transform_1, window_bounds = array<i64: 2, 32>}, {pipeline_mode = #tpu.pipeline_mode<synchronous>, transform_indices = @transform_2, window_bounds = array<i64: 1, 32>}, {pipeline_mode = #tpu.pipeline_mode<synchronous>, transform_indices = @transform_3, window_bounds = array<i64: 32, 32>}, {pipeline_mode = #tpu.pipeline_mode<synchronous>, transform_indices = @transform_4, window_bounds = array<i64: 1, 32>}, {transform_indices = @transform_5, window_bounds = array<i64: 32, 32>}]} {
    %c0 = arith.constant 0 : index
    %c0_0 = arith.constant 0 : index
    %0 = vector.load %arg1[%c0, %c0_0] : memref<32x2xf32, #tpu.memory_space<vmem>>, vector<32x2xf32>
    %1 = arith.fptosi %0 : vector<32x2xf32> to vector<32x2xi32>
    %2 = arith.sitofp %1 : vector<32x2xi32> to vector<32x2xf32>
    %3 = vector.extract_strided_slice %2 {offsets = [0, 0], sizes = [32, 1], strides = [1, 1]} : vector<32x2xf32> to vector<32x1xf32>
    %c0_1 = arith.constant 0 : index
    %c0_2 = arith.constant 0 : index
    %4 = vector.load %arg2[%c0_1, %c0_2] : memref<2x32xf32, #tpu.memory_space<vmem>>, vector<1x32xf32>
    %5 = vector.broadcast %3 : vector<32x1xf32> to vector<32x32xf32>
    %6 = vector.broadcast %4 : vector<1x32xf32> to vector<32x32xf32>
    %7 = arith.mulf %5, %6 : vector<32x32xf32>
    %8 = vector.extract_strided_slice %2 {offsets = [0, 1], sizes = [32, 1], strides = [1, 1]} : vector<32x2xf32> to vector<32x1xf32>
    %c1 = arith.constant 1 : index
    %c0_3 = arith.constant 0 : index
    %9 = vector.load %arg2[%c1, %c0_3] : memref<2x32xf32, #tpu.memory_space<vmem>>, vector<1x32xf32>
    %10 = vector.broadcast %8 : vector<32x1xf32> to vector<32x32xf32>
    %11 = vector.broadcast %9 : vector<1x32xf32> to vector<32x32xf32>
    %12 = arith.mulf %10, %11 : vector<32x32xf32>
    %13 = arith.addf %7, %12 : vector<32x32xf32>
    %c0_4 = arith.constant 0 : index
    %c0_5 = arith.constant 0 : index
    %14 = vector.load %arg3[%c0_4, %c0_5] : memref<1x32xf32, #tpu.memory_space<vmem>>, vector<1x32xf32>
    %15 = vector.broadcast %14 : vector<1x32xf32> to vector<32x32xf32>
    %16 = arith.addf %13, %15 : vector<32x32xf32>
    %17 = math.tanh %16 : vector<32x32xf32>
    %c0_6 = arith.constant 0 : index
    %c0_7 = arith.constant 0 : index
    %18 = vector.load %arg4[%c0_6, %c0_7] : memref<32x32xf32, #tpu.memory_space<vmem>>, vector<32x32xf32>
    %cst = arith.constant dense<0.000000e+00> : vector<32x32xf32>
    %19 = tpu.matmul %17, %18, %cst {dimension_numbers = #tpu.dot_dimension_numbers<[1], [0], [0], [1], [0, 0, 1, 1], [], []>} : vector<32x32xf32>, vector<32x32xf32>, vector<32x32xf32> -> vector<32x32xf32>
    %c0_8 = arith.constant 0 : index
    %c0_9 = arith.constant 0 : index
    %20 = vector.load %arg5[%c0_8, %c0_9] : memref<1x32xf32, #tpu.memory_space<vmem>>, vector<1x32xf32>
    %21 = vector.broadcast %20 : vector<1x32xf32> to vector<32x32xf32>
    %22 = arith.addf %19, %21 : vector<32x32xf32>
    %cst_10 = arith.constant 0.000000e+00 : f32
    %23 = vector.broadcast %cst_10 : f32 to vector<32x32xf32>
    %24 = arith.cmpf ogt, %22, %23 : vector<32x32xf32>
    %25 = arith.extui %24 : vector<32x32xi1> to vector<32x32xi8>
    %c0_11 = arith.constant 0 : index
    %c0_12 = arith.constant 0 : index
    %26 = vector.load %arg6[%c0_11, %c0_12] : memref<32x32xi8, #tpu.memory_space<vmem>>, vector<32x32xi8>
    tpu.vector_store %arg6[%c0_11, %c0_12], %25 {strides = array<i32>} : memref<32x32xi8, #tpu.memory_space<vmem>>, vector<32x32xi8>,
    return
  }
  func.func @transform_0(%arg0: i32) -> (i32, i32) {
    %c0_i32 = arith.constant 0 : i32
    %c0_i32_0 = arith.constant 0 : i32
    return %arg0, %c0_i32 : i32, i32
  }
  func.func @transform_1(%arg0: i32) -> (i32, i32) {
    %c0_i32 = arith.constant 0 : i32
    %c0_i32_0 = arith.constant 0 : i32
    %c0_i32_1 = arith.constant 0 : i32
    return %c0_i32, %c0_i32_0 : i32, i32
  }
  func.func @transform_2(%arg0: i32) -> (i32, i32) {
    %c0_i32 = arith.constant 0 : i32
    %c0_i32_0 = arith.constant 0 : i32
    %c0_i32_1 = arith.constant 0 : i32
    return %c0_i32, %c0_i32_0 : i32, i32
  }
  func.func @transform_3(%arg0: i32) -> (i32, i32) {
    %c0_i32 = arith.constant 0 : i32
    %c0_i32_0 = arith.constant 0 : i32
    %c0_i32_1 = arith.constant 0 : i32
    return %c0_i32, %c0_i32_0 : i32, i32
  }
  func.func @transform_4(%arg0: i32) -> (i32, i32) {
    %c0_i32 = arith.constant 0 : i32
    %c0_i32_0 = arith.constant 0 : i32
    %c0_i32_1 = arith.constant 0 : i32
    return %c0_i32, %c0_i32_0 : i32, i32
  }
  func.func @transform_5(%arg0: i32) -> (i32, i32) {
    %c0_i32 = arith.constant 0 : i32
    %c0_i32_0 = arith.constant 0 : i32
    return %arg0, %c0_i32 : i32, i32
  }
}

</mosaic_0001>

<bundles_post_ra>
// kernel: tpu_custom_call.1
= control target key start
LH: loop header
LB: loop body
LE: loop exit
PB: predicated region body
PF: predicated region fallthrough
CT: control target
= control target key end

     0   :  { %v330_v3 = vmov 1   ;;  %v331_v4 = vmov 0   ;;  %s419_s0 = inlined_call_operand.vmem [shape: f32[32,2], index: 0, kind: input, shape index: {}]   ;;  %s420_s1 = inlined_call_operand.vmem [shape: f32[2,32], index: 1, kind: input, shape index: {}]   ;;  %s421_s2 = inlined_call_operand.vmem [shape: f32[1,32], index: 2, kind: input, shape index: {}]   ;;  %s422_s3 = inlined_call_operand.vmem [shape: f32[32,32], index: 3, kind: input, shape index: {}]   ;;  %s423_s4 = inlined_call_operand.vmem [shape: f32[1,32], index: 4, kind: input, shape index: {}]   ;;  %s424_s5 = inlined_call_operand.hbm [shape: s8[32,32], index: 5, kind: output, shape index: {}]  }
   0x1   :  { %v23_v0 = vld [vmem:[%s419_s0] sm:$0xff]  ;;  %v25_v1 = vld [vmem:[%s419_s0 + $0x10] sm:$0xff]  ;;  %v24_v2 = vld [vmem:[%s419_s0 + $0x8] sm:$0xff]  ;;  %294 = vset.pattern.permute.xlu1 %v330_v3  ;;  %293 = vset.pattern.permute.xlu0 %v331_v4 }
   0x2   :  { %v282_v5 = vtrunc.f32 %v23_v0  ;;  %v286_v6 = vtrunc.f32 %v25_v1  ;;  %v26_v7 = vld [vmem:[%s419_s0 + $0x18] sm:$0xff] }
   0x3   :  { %10 = vsyncpa [#allocation3], 0  ;;  %v284_v10 = vtrunc.f32 %v24_v2  ;;  %v288_v11 = vtrunc.f32 %v26_v7  ;;  %v108_v18 = vld [vmem:[%s422_s3] sm:$0xff]  ;;  %v109_v19 = vld [vmem:[%s422_s3 + $0x8] sm:$0xff]  ;;  %vm119_vm0 = vcmask 261120   ;;  %s332_s13 = smov [#allocation2]  }
   0x4   :  { %v283_v8 = vcvt.f32.s32 %v282_v5  ;;  %v287_v9 = vcvt.f32.s32 %v286_v6  ;;  %v270_v20 = vpack.c.bf16 %v109_v19, %v108_v18  ;;  %v110_v21 = vld [vmem:[%s422_s3 + $0x10] sm:$0xff]  ;;  %v111_v22 = vld [vmem:[%s422_s3 + $0x18] sm:$0xff]  ;;  %v241_v24 = vld [vmem:[%s420_s1 + $0x1] ss:$0 sm:$0xff]  ;;  %s232_s14 = sshll.u32 %s332_s13, 4  ;;  %s233_s14 = int_to_ptr.vmem [resolvable:$true] %s232_s14 }
   0x5   :  { %v285_v14 = vcvt.f32.s32 %v284_v10  ;;  %v289_v15 = vcvt.f32.s32 %v288_v11  ;;  %v274_v23 = vpack.c.bf16 %v111_v22, %v110_v21  ;;  %v240_v25 = vld [vmem:[%s420_s1] ss:$0 sm:$0xff]  ;;  %p311_p1 = scmp.lt.s32.totalorder %s233_s14, %s233_s14 }
   0x6   :  { %v31_v12 = vcvt.s32.f32 %v283_v8  ;;  %v33_v13 = vcvt.s32.f32 %v287_v9  ;;  %271 = vmatprep.subr.bf16.mxu0 %v270_v20  ;;  %278 = vmatprep.subr.bf16.mxu1 %v270_v20  ;;  %v242_v30 = vld [vmem:[%s421_s2] ss:$0 sm:$0xff] }
   0x7   :  { %v32_v16 = vcvt.s32.f32 %v285_v14  ;;  %v34_v17 = vcvt.s32.f32 %v289_v15  ;;  %273 = vmatpush3.bf16.msra.mxu0 %v270_v20  ;;  %280 = vmatpush3.bf16.msra.mxu1 %v270_v20  ;;  %v243_v55 = vld [vmem:[%s423_s4] ss:$0 sm:$0xff]  ;;  %s306_s4 = scalar_lea.vmem %s233_s14, 128 }
   0x8   :  { %66 = vperm.xlu1 %294, %v31_v12   ;;  %38 = vperm.xlu0 %293, %v31_v12   ;;  %p307_p0 = scmp.ne.s32.totalorder %s233_s14, %s306_s4  ;;  %p312_p2 = scmp.lt.s32.totalorder %s306_s4, %s306_s4 }
   0x9   :  { %275 = vmatprep.subr.bf16.mxu0 %v274_v23  ;;  %279 = vmatprep.subr.bf16.mxu1 %v274_v23 }
   0xa   :  { %p313_p3 = por %p312_p2, %p311_p1 }
   0xb   :  { %277 = vmatpush3.bf16.msra.mxu0 %v274_v23  ;;  %281 = vmatpush3.bf16.msra.mxu1 %v274_v23 }
   0xc   :  { %74 = vperm.xlu1 %294, %v33_v13   ;;  %48 = vperm.xlu0 %293, %v33_v13   ;;  %p314_p4 = pnand %p313_p3, %p307_p0 }
  0x10   :  { %295 = vset.pattern.permute.xlu1 %v331_v4  ;;  %43 = vperm.xlu0 %293, %v32_v16  }
  0x11   :  { %53 = vperm.xlu1 %295, %v34_v17  }
  0x14   :  { %296 = vset.pattern.permute.xlu0 %v330_v3 }
  0x15   :  { %297 = vset.pattern.permute.xlu1 %v330_v3  ;;  %70 = vperm.xlu0 %296, %v32_v16  }
  0x16   :  { %78 = vperm.xlu1 %297, %v34_v17  }
  0x87   :  { %v67_v26 = vpop.permute.xlu1 %66  ;;  %v39_v27 = vpop.permute.xlu0 %38 }
  0x88   :  { %v85_v28 = vmul.f32 %v241_v24, %v67_v26  ;;  %v60_v29 = vmul.f32 %v240_v25, %v39_v27 }
  0x8a   :  { %v89_v31 = vadd.f32 %v85_v28, %v60_v29 }
  0x8b   :  { %v75_v32 = vpop.permute.xlu1 %74  ;;  %v49_v33 = vpop.permute.xlu0 %48 }
  0x8c   :  { %v100_v34 = vadd.f32 %v242_v30, %v89_v31  ;;  %v87_v35 = vmul.f32 %v241_v24, %v75_v32  ;;  %v62_v36 = vmul.f32 %v240_v25, %v49_v33 }
  0x8e   :  { %298 = vtanh.f32 %v100_v34  ;;  %v91_v37 = vadd.f32 %v87_v35, %v62_v36 }
  0x8f   :  { %v44_v38 = vpop.permute.xlu0 %43 }
  0x90   :  { %v102_v39 = vadd.f32 %v242_v30, %v91_v37  ;;  %v54_v40 = vpop.permute.xlu1 %53  ;;  %v61_v42 = vmul.f32 %v240_v25, %v44_v38 }
  0x91   :  { %v63_v45 = vmul.f32 %v240_v25, %v54_v40 }
  0x92   :  { %300 = vtanh.f32 %v102_v39 }
  0x94   :  { %v71_v41 = vpop.permute.xlu0 %70 }
  0x95   :  { %v86_v43 = vmul.f32 %v241_v24, %v71_v41  ;;  %v79_v44 = vpop.permute.xlu1 %78 }
  0x96   :  { %v88_v46 = vmul.f32 %v241_v24, %v79_v44 }
  0x97   :  { %v90_v47 = vadd.f32 %v86_v43, %v61_v42 }
  0x98   :  { %v299_v48 = vpop.eup %298  ;;  %v92_v49 = vadd.f32 %v88_v46, %v63_v45 }
  0x99   :  { %v101_v50 = vadd.f32 %v242_v30, %v90_v47  ;;  %264 = vmatprep.mubr.msk.f32.mxu0 %vm119_vm0, %v299_v48 }
  0x9a   :  { %v103_v51 = vadd.f32 %v242_v30, %v92_v49 }
  0x9b   :  { %302 = vtanh.f32 %v101_v50 }
  0x9c   :  { %v301_v52 = vpop.eup %300  ;;  %304 = vtanh.f32 %v103_v51 }
  0x9d   :  { %267 = vmatprep.mubr.msk.f32.mxu1 %vm119_vm0, %v301_v52 }
  0xa5   :  { %v303_v53 = vpop.eup %302 }
  0xa6   :  { %v305_v54 = vpop.eup %304  ;;  %265 = vmatmul.mubr.msk.f32.vlgmr.msra.gmra.mrb[0].mxu0 %vm119_vm0, %v303_v53 }
  0xa7   :  { %268 = vmatmul.mubr.msk.f32.vlgmr.msra.gmra.mrb[0].mxu1 %vm119_vm0, %v305_v54 }
 0x179   :  { %v266_v56 = vpop.f32.mrb[0].mxu0 }
 0x17a   :  { %v204_v57 = vadd.f32 %v266_v56, %v243_v55  ;;  %v198_v58 = vpop.f32.mrb[1].mxu0  ;;  %v269_v59 = vpop.f32.mrb[0].mxu1 }
 0x17b   :  { %v199_v60 = vadd.f32 %v243_v55, %v198_v58  ;;  %v214_v61 = vadd.f32 %v269_v59, %v243_v55  ;;  %v208_v62 = vpop.f32.mrb[1].mxu1 }
 0x17c   :  { %vm218_vm1 = vcmp.gt.f32.partialorder %v204_v57, 0.0  ;;  %v209_v63 = vadd.f32 %v243_v55, %v208_v62 }
 0x17d   :  { %vm217_vm2 = vcmp.gt.f32.partialorder %v199_v60, 0.0  ;;  %vm220_vm3 = vcmp.gt.f32.partialorder %v214_v61, 0.0 }
 0x17e   :  { %vm221_vm4 = vmpackc.low %vm218_vm1, %vm217_vm2  ;;  %vm219_vm5 = vcmp.gt.f32.partialorder %v209_v63, 0.0 }
 0x17f   :  { %vm222_vm6 = vmpackc.low %vm220_vm3, %vm219_vm5 }
 0x180   :  { %vm223_vm7 = vmpackc.even %vm222_vm6, %vm221_vm4 }
 0x181   :  { %v224_v0 = vsel %vm223_vm7, 16843009, %v331_v4 }
 0x182   :  { %225 = vst.msk [vmem:[#allocation2] sm:$0xff] %vm119_vm0, %v224_v0 }
 0x183   :  { %317 = shalt.err (!%p314_p4)
}
 0x184   :  { %s318_s17 = scalar_lea.hbm %s424_s5, 128 }
 0x185   :  { %p319_p5 = scmp.ne.s32.totalorder %s424_s5, %s318_s17  ;;  %p322_p6 = scmp.lt.u32.totalorder %s318_s17, %s424_s5 }
 0x187   :  { %p324_p7 = pnand %p322_p6, %p319_p5 }
 0x189   :  { %327 = shalt.err (!%p324_p7)
}
 0x18a   :  { %235 = dma.vmem_to_hbm [thread:$0]  %s233_s14, 128, %s424_s5, [#allocation3]  }
 0x18b   :  { %328 = dma.done.wait [#allocation3], 128  }
 0x18c   :  { %329 = vsyncadd [#allocation3], 4294967168 }
 0x18d   :  { %239 = vsyncpa [#allocation3], 1 }

</bundles_post_ra>
